<compile_context>
chip_gen: v7x
topology: tpu7x:2x2x1
jax: 0.10.0
libtpu: 0.0.40
codegen_flags: <defaults>
</compile_context>

<pallas_src>
import math

import jax
import jax.numpy as jnp
from jax.experimental import pallas as pl
from jax.experimental.pallas import tpu as pltpu


def _downblock_kernel(x_ref, w_ref, b_ref, o_ref):
    """One (C_out-tile, lane-tile) output block per grid step.

    x_ref: (9*C_in, TL)   bf16 - tap-major / channel-minor rows, lanes = flattened (n, r, ow)
    w_ref: (TCO, 9*C_in)  bf16
    b_ref: (TCO, 1)       f32
    o_ref: (TCO, TL)
    """
    acc = jnp.dot(w_ref[...], x_ref[...], preferred_element_type=jnp.float32)  # K = 9*C MXU
    o_ref[...] = (acc + b_ref[...]).astype(o_ref.dtype)


def _pick_tile(total: int, max_tile: int, align: int) -> int:
    """Largest tile <= max_tile that is the full extent or an align-multiple divisor of total."""
    if total <= max_tile:
        return total
    t = (max_tile // align) * align
    while t >= align:
        if total % t == 0:
            return t
        t -= align
    return total  # fallback: single full block


def down_block(x, weight, bias):
    """Forward of DownBlock: Conv2d(C, C, kernel_size=3, stride=2, padding=1)."""
    N, C, H, W = x.shape
    h_out = (H - 1) // 2 + 1
    w_out = (W - 1) // 2 + 1
    m = h_out * w_out
    L = N * m                                   # batch folded into the lane dim

    # Conv's own zero padding (pad=1).  Every tap plane below stays in range for any H/W.
    x_pad = jnp.pad(x, ((0, 0), (0, 0), (1, 1), (1, 1)))

    # 9 exact per-tap planes: plane[t][n, c, r, ow] = x_pad[n, c, 2r + kh, 2ow + kw],
    # t = 3*kh + kw.  Pure strided gather (no im2col duplication beyond the 9 taps, no
    # in-kernel shifting needed).
    planes = []
    for kh in range(3):
        for kw in range(3):
            sel = x_pad[:, :, kh::2, kw::2][:, :, :h_out, :w_out]   # (N, C, h_out, w_out)
            planes.append(sel)
    x9 = jnp.stack(planes, axis=0)                                   # (9, N, C, h_out, w_out)
    x9 = jnp.transpose(x9, (0, 2, 1, 3, 4)).reshape(9 * C, L)        # rows = t*C + ci
    x9 = x9.astype(jnp.bfloat16)

    # (C_out, C_in, 3, 3) -> (C_out, 9*C_in), column index = (3*kh + kw)*C + ci  (matches x9).
    w2 = jnp.transpose(weight, (0, 2, 3, 1)).reshape(C, 9 * C).astype(jnp.bfloat16)
    b_col = bias.reshape(C, 1).astype(jnp.float32)

    # Tiling: lane tiles are 128-multiples (or the full extent), C_out tiles 8-multiples.
    tl = _pick_tile(L, 2048, 128)
    tco = _pick_tile(C, 256, 8)
    n_l = pl.cdiv(L, tl)
    n_co = pl.cdiv(C, tco)
    # Guarantee >= 2 parallel grid steps (keeps both v7x TensorCores busy; ~free elsewhere).
    if n_l * n_co == 1 and C >= 16 and C % 16 == 0:
        tco = C // 2
        n_co = 2

    out_itemsize = jnp.dtype(x.dtype).itemsize
    x_blk = 9 * C * tl * 2
    w_blk = tco * 9 * C * 2
    o_blk = tco * tl * out_itemsize
    b_blk = tco * 4
    need = 2 * (x_blk + w_blk + o_blk + b_blk)          # double-buffered pipeline estimate
    vmem_limit = int(min(max(2 * need, 16 << 20), 96 << 20))

    cost = pl.CostEstimate(
        flops=2 * C * (9 * C) * L,
        transcendentals=0,
        bytes_accessed=x9.size * 2 + w2.size * 2 + b_col.size * 4 + C * L * out_itemsize,
    )

    out_flat = pl.pallas_call(
        _downblock_kernel,
        out_shape=jax.ShapeDtypeStruct((C, L), x.dtype),
        grid=(n_co, n_l),
        in_specs=[
            pl.BlockSpec((9 * C, tl), lambda i, j: (0, j)),     # activations: lane-tiled
            pl.BlockSpec((tco, 9 * C), lambda i, j: (i, 0)),    # weights: invariant over lanes
            pl.BlockSpec((tco, 1), lambda i, j: (i, 0)),        # bias
        ],
        out_specs=pl.BlockSpec((tco, tl), lambda i, j: (i, j)),
        compiler_params=pltpu.CompilerParams(
            dimension_semantics=("parallel", "parallel"),
            vmem_limit_bytes=vmem_limit,
        ),
        cost_estimate=cost,
    )(x9, w2, b_col)

    # (C, N*M) -> (N, C, h_out, w_out)
    out = out_flat.reshape(C, N, h_out, w_out)
    return jnp.transpose(out, (1, 0, 2, 3))


def reference(x, weight, bias):
    """Pure-JAX/XLA reference of the PyTorch forward (f32, highest precision)."""
    out = jax.lax.conv_general_dilated(
        x, weight, window_strides=(2, 2), padding=((1, 1), (1, 1)),
        dimension_numbers=("NCHW", "OIHW", "NCHW"),
        precision=jax.lax.Precision.HIGHEST)
    return out + bias.reshape(1, -1, 1, 1)


if __name__ == "__main__":
    N, C, H, W = 2, 32, 16, 16
    key = jax.random.PRNGKey(0)
    k1, k2, k3 = jax.random.split(key, 3)

    # PyTorch Conv2d default init: U(-b, b) with b = 1/sqrt(fan_in) = 1/sqrt(C*3*3)
    bound = 1.0 / math.sqrt(C * 3 * 3)
    weight = jax.random.uniform(k1, (C, C, 3, 3), jnp.float32, -bound, bound)
    bias = jax.random.uniform(k2, (C,), jnp.float32, -bound, bound)
    x = jax.random.normal(k3, (N, C, H, W), jnp.float32)

    out = jax.block_until_ready(down_block(x, weight, bias))
    ref = reference(x, weight, bias)

    assert out.shape == (N, C, H // 2, W // 2), out.shape
    # bf16 MXU inputs with f32 accumulation -> loosened tolerance vs the f32 reference.
    assert jnp.allclose(out, ref, atol=5e-2, rtol=5e-2), \
        float(jnp.max(jnp.abs(out - ref)))

    print("KERNEL_OK")
</pallas_src>

<mosaic_0001>
module attributes {stable_mosaic.version = 11 : i64} {
  func.func @_downblock_kernel(%arg0: i32, %arg1: i32, %arg2: memref<288x128xbf16, #tpu.memory_space<vmem>>, %arg3: memref<16x288xbf16, #tpu.memory_space<vmem>>, %arg4: memref<16x1xf32, #tpu.memory_space<vmem>>, %arg5: memref<16x128xf32, #tpu.memory_space<vmem>>) attributes {dimension_semantics = [#tpu.dimension_semantics<parallel>, #tpu.dimension_semantics<parallel>], iteration_bounds = array<i64: 2, 1>, scalar_prefetch = 0 : i64, scratch_operands = 0 : i64, tpu.core_type = #tpu.core_type<tc>, window_params = [{transform_indices = @transform_0, window_bounds = array<i64: 288, 128>}, {transform_indices = @transform_1, window_bounds = array<i64: 16, 288>}, {transform_indices = @transform_2, window_bounds = array<i64: 16, 1>}, {transform_indices = @transform_3, window_bounds = array<i64: 16, 128>}]} {
    %c0 = arith.constant 0 : index
    %c0_0 = arith.constant 0 : index
    %0 = vector.load %arg3[%c0, %c0_0] : memref<16x288xbf16, #tpu.memory_space<vmem>>, vector<16x288xbf16>
    %c0_1 = arith.constant 0 : index
    %c0_2 = arith.constant 0 : index
    %1 = vector.load %arg2[%c0_1, %c0_2] : memref<288x128xbf16, #tpu.memory_space<vmem>>, vector<288x128xbf16>
    %cst = arith.constant dense<0.000000e+00> : vector<16x128xf32>
    %2 = tpu.matmul %0, %1, %cst {dimension_numbers = #tpu.dot_dimension_numbers<[1], [0], [0], [1], [0, 0, 1, 1], [], []>} : vector<16x288xbf16>, vector<288x128xbf16>, vector<16x128xf32> -> vector<16x128xf32>
    %c0_3 = arith.constant 0 : index
    %c0_4 = arith.constant 0 : index
    %3 = vector.load %arg4[%c0_3, %c0_4] : memref<16x1xf32, #tpu.memory_space<vmem>>, vector<16x1xf32>
    %4 = vector.broadcast %3 : vector<16x1xf32> to vector<16x128xf32>
    %5 = arith.addf %2, %4 : vector<16x128xf32>
    %c0_5 = arith.constant 0 : index
    %c0_6 = arith.constant 0 : index
    %6 = vector.load %arg5[%c0_5, %c0_6] : memref<16x128xf32, #tpu.memory_space<vmem>>, vector<16x128xf32>
    tpu.vector_store %arg5[%c0_5, %c0_6], %5 {strides = array<i32>} : memref<16x128xf32, #tpu.memory_space<vmem>>, vector<16x128xf32>,
    return
  }
  func.func @transform_0(%arg0: i32, %arg1: i32) -> (i32, i32) {
    %c0_i32 = arith.constant 0 : i32
    %c0_i32_0 = arith.constant 0 : i32
    return %c0_i32, %arg1 : i32, i32
  }
  func.func @transform_1(%arg0: i32, %arg1: i32) -> (i32, i32) {
    %c0_i32 = arith.constant 0 : i32
    %c0_i32_0 = arith.constant 0 : i32
    return %arg0, %c0_i32 : i32, i32
  }
  func.func @transform_2(%arg0: i32, %arg1: i32) -> (i32, i32) {
    %c0_i32 = arith.constant 0 : i32
    %c0_i32_0 = arith.constant 0 : i32
    return %arg0, %c0_i32 : i32, i32
  }
  func.func @transform_3(%arg0: i32, %arg1: i32) -> (i32, i32) {
    %c0_i32 = arith.constant 0 : i32
    return %arg0, %arg1 : i32, i32
  }
}

</mosaic_0001>

<bundles_post_ra>
// kernel: tpu_custom_call.1
= control target key start
LH: loop header
LB: loop body
LE: loop exit
PB: predicated region body
PF: predicated region fallthrough
CT: control target
= control target key end

     0   :  { %8 = vsyncpa [#allocation3], 0  ;;  %s1221_s0 = inlined_call_operand.hbm [shape: bf16[288,128], index: 0, kind: input, shape index: {}]   ;;  %s1222_s1 = inlined_call_operand.hbm [shape: bf16[32,288], index: 1, kind: input, shape index: {}]   ;;  %s1223_s2 = inlined_call_operand.vmem [shape: f32[32,1], index: 2, kind: input, shape index: {}]   ;;  %s1224_s3 = inlined_call_operand.hbm [shape: f32[32,128], index: 3, kind: output, shape index: {}]  }
   0x1   :  { %9 = vsyncpa [#allocation6], 0 }
   0x2   :  { %11 = vsyncpa [#allocation6 + $0x1], 0 }
   0x3   :  { %12 = vsyncpa [#allocation4], 0 }
   0x4   :  { %14 = vsyncpa [#allocation4 + $0x1], 0  ;;  %s998_s12 = smov 0   ;;  %s1000_s13 = smov 0  }
   0x5   :  { %s1002_s14 = smov 0   ;;  %s1004_s15 = smov 0  }
   0x6   :  { %s1006_s16 = smov 0   ;;  %s1008_s17 = smov 0  }
   0x7 LB: > { %s638_s18 = sadd.s32 4294967295, %s964_s17   ;;  %s639_s19 = sadd.s32 4294967294, %s964_s17   ;;  %s964_s17 = sphi %s1008_s17, %s20_s17   ;;  %s960_s16 = sphi %s1006_s16, %s1247_s16   ;;  %s956_s15 = sphi %s1004_s15, %s1246_s15   ;;  %s952_s14 = sphi %s1002_s14, %s1245_s14   ;;  %s948_s13 = sphi %s1000_s13, %s1244_s13   ;;  %s944_s12 = sphi %s998_s12, %s1243_s12  }
   0x8   : > { %p78_p0 = scmp.ne.s32.totalorder %s948_s13, %s944_s12  ;;  %p1032_p1 = scmp.eq.s32.totalorder %s638_s18, 0 }
   0x9   : > { %p1036_p2 = scmp.eq.s32.totalorder %s638_s18, 1  ;;  %p136_p3 = scmp.eq.s32.totalorder %s639_s19, 1 }
   0xa   : > { %s1229_s20 = scalar_select %p1032_p1, 1, 0 }
   0xb   : > { %s1230_s21 = scalar_select %p1036_p2, 1, 0 }
   0xc   : > { %p1042_p4 = por %p1032_p1, %p78_p0  ;;  %p640_p5 = scmp.ge.s32.totalorder %s964_s17, 1 }
   0xd   : > { %p1047_p6 = por %p136_p3, %p78_p0  ;;  %p143_p7 = scmp.lt.s32.totalorder %s964_s17, 3 }
   0xe   : > { %s1231_s22 = scalar_select %p1042_p4, 1, 0 }
   0xf   : > { %s1232_s23 = scalar_select %p1047_p6, 1, 0 }
  0x10   : > { %p1052_p8 = pnand %p640_p5, %p143_p7  ;;  %s966_s25 = smov [#allocation2]  }
  0x11   : > { %s157_s26 = sshll.u32 %s966_s25, 4  ;;  %s32_s28 = sadd.s32 1, %s960_s16  ;;  %s158_s26 = int_to_ptr.vmem [resolvable:$true] %s157_s26 }
  0x12   : > { %s1233_s24 = scalar_select %p1052_p8, 1, 0 }
  0x13   : > { %p723_p9 = pneg %p1052_p8  ;;  %s820_s4 = scalar_lea.hbm %s1221_s0, 2304 }
  0x14   : > { %p821_p12 = scmp.ne.s32.totalorder %s1221_s0, %s820_s4  ;;  %p827_p5 = scmp.lt.u32.totalorder %s820_s4, %s1221_s0 }
  0x15   : > { %p1061_p11 = pnand %p723_p9, %p1032_p1 }
  0x17   : > { %p822_p13 = pneg %p1061_p11 }
  0x19   : > { %p823_p0 = pnand %p822_p13, %p821_p12 }
  0x1b   : > { %p824_p3 = pneg %p823_p0 }
  0x1d   : > { %p829_p7 = pnand %p827_p5, %p824_p3 }
  0x1f   : > { %832 = shalt.err (!%p829_p7)
}
  0x20   : > { %s833_s9 = scalar_lea.vmem %s158_s26, 2304  ;;  %p841_p4 = scmp.lt.s32.totalorder %s158_s26, %s158_s26 }
  0x21   : > { %p834_p9 = scmp.ne.s32.totalorder %s158_s26, %s833_s9  ;;  %p842_p1 = scmp.lt.s32.totalorder %s833_s9, %s833_s9 }
  0x23   : > { %p836_p10 = pnand %p834_p9, %p822_p13  ;;  %p843_p8 = por %p842_p1, %p841_p4 }
  0x25   : > { %p837_p6 = pneg %p836_p10 }
  0x27   : > { %p844_p2 = pnand %p843_p8, %p837_p6 }
  0x29   : > { %847 = shalt.err (!%p844_p2)
}
  0x2a   : > { %s967_s10 = smov 64   ;;  %s968_s11 = smov 4  }
  0x2b   : > { %726 = dma.hbm_to_vmem [thread:$0]  (!%p1061_p11), %s1221_s0, 2304, %s158_s26, [#allocation3], %s967_s10, %s967_s10, %s968_s11  }
  0x2c   : > { %p34_p1 = scmp.ge.s32.totalorder %s32_s28, 2  ;;  %s65_s25 = sadd.s32 1, %s952_s14 }
  0x2d   : > { %p72_p2 = scmp.ne.s32.totalorder %s952_s14, %s948_s13  ;;  %p73_p4 = scmp.eq.s32.totalorder %s964_s17, 0 }
  0x2e   : > { %s1249_s28 = smov (%p34_p1, %s32_s28), 0  ;;  %p1235_p8 = scmp.ne.s32.totalorder %s1230_s21, 0 }
  0x2f   : > { %p74_p6 = por %p73_p4, %p72_p2  ;;  %s62_s30 = ssub.s32 %s960_s16, %s1249_s28 }
  0x30   : > { %p1090_p10 = por %p1235_p8, %p72_p2  ;;  %p736_p12 = scmp.lt.s32.totalorder %s964_s17, 2 }
  0x31   : > { %p63_p13 = scmp.eq.s32.totalorder %s62_s30, 0  ;;  %s171_s27 = sand.u32 1, %s952_s14  }
  0x32   : > { %s712_s4 = smul.u32 24, %s171_s27  ;;  %p1102_p11 = pnand %p736_p12, %p74_p6 }
  0x33   : > { %s1099_s5 = scalar_select %p63_p13, %s952_s14, %s65_s25  }
  0x34   : > { %s713_s26 = smul.u32 384, %s960_s16  ;;  %s175_s6 = scalar_lea.vmem [#allocation5], %s712_s4 }
  0x35   : > { %s183_s7 = sshll.u32 %s175_s6, 4  ;;  %s1113_s11 = scalar_lea.sflag [#allocation6], %s171_s27  ;;  %s1111_s7 = int_to_ptr.vmem [resolvable:$true] %s183_s7 }
  0x36   : > { %s1109_s10 = scalar_lea.hbm %s1222_s1, %s713_s26  ;;  %p850_p3 = pneg %p1102_p11 }
  0x37   : > { %s848_s18 = scalar_lea.hbm %s1109_s10, 384  ;;  %s853_s30 = scalar_lea.hbm %s1222_s1, 768 }
  0x38   : > { %p849_p0 = scmp.ne.s32.totalorder %s1109_s10, %s848_s18  ;;  %p854_p9 = scmp.lt.u32.totalorder %s1109_s10, %s1222_s1 }
  0x39   : > { %p855_p1 = scmp.lt.u32.totalorder %s853_s30, %s848_s18  ;;  %p857_p4 = scmp.lt.u32.totalorder %s848_s18, %s1109_s10 }
  0x3a   : > { %p851_p5 = pnand %p850_p3, %p849_p0 }
  0x3b   : > { %p856_p2 = por %p855_p1, %p854_p9 }
  0x3c   : > { %p852_p7 = pneg %p851_p5 }
  0x3d   : > { %p858_p6 = por %p857_p4, %p856_p2 }
  0x3f   : > { %p859_p8 = pnand %p858_p6, %p852_p7 }
  0x41   : > { %862 = shalt.err (!%p859_p8)
}
  0x42   : > { %s863_s27 = scalar_lea.vmem %s1111_s7, 384  ;;  %s969_s6 = smov [#allocation5]  }
  0x43   : > { %p864_p12 = scmp.ne.s32.totalorder %s1111_s7, %s863_s27  ;;  %s868_s9 = sshll.u32 %s969_s6, 4  ;;  %s869_s9 = int_to_ptr.vmem [resolvable:$false] %s868_s9 }
  0x44   : > { %s870_s21 = scalar_lea.vmem %s869_s9, 768  ;;  %p871_p5 = scmp.lt.s32.totalorder %s1111_s7, %s869_s9 }
  0x45   : > { %p866_p13 = pnand %p864_p12, %p850_p3  ;;  %p872_p9 = scmp.lt.s32.totalorder %s870_s21, %s863_s27 }
  0x47   : > { %p867_p0 = pneg %p866_p13  ;;  %p873_p1 = por %p872_p9, %p871_p5 }
  0x49   : > { %p874_p2 = pnand %p873_p1, %p867_p0 }
  0x4b   : > { %877 = shalt.err (!%p874_p2)
}
  0x4c   : > { %s970_s18 = smov 192   ;;  %s971_s19 = smov 12  }
  0x4d   : > { %730 = dma.hbm_to_vmem [thread:$0]  (!%p1102_p11), %s1109_s10, 384, %s1111_s7, %s1113_s11, %s970_s18, %s970_s18, %s971_s19  }
  0x4e   : > { %p1238_p3 = scmp.ne.s32.totalorder %s1233_s24, 0 }
  0x4f   : > { %p1239_p7 = scmp.ne.s32.totalorder (!%p1238_p3), %s1229_s20, 0 }
  0x50   : > { %204 = sbr.rel (%p1238_p3) target bundleno = 363 (0x16b), region = 32 }
  0x57   : > { %931 = dma.done.wait (%p1239_p7), [#allocation3], 2304  }
  0x58   : > { %933 = vsyncadd (%p1239_p7), [#allocation3], 4294964992  ;;  %s1148_s25 = sand.u32 1, %s948_s13   ;;  %p1240_p11 = scmp.ne.s32.totalorder %s1231_s22, 0 }
  0x59   : > { %s714_s30 = smul.u32 24, %s1148_s25  ;;  %s211_s4 = scalar_lea.sflag [#allocation6], %s1148_s25 }
  0x5b   : > { %s1152_s26 = scalar_lea.vmem [#allocation5], %s714_s30 }
  0x5c   : > { %935 = dma.done.wait (%p1240_p11), %s211_s4, 384  }
  0x5d   : > { %937 = vsyncadd (%p1240_p11), %s211_s4, 4294966912  ;;  %v972_v0 = vmov 0.0   ;;  %vm973_vm0 = vmmov 0   ;;  %v974_v1 = vmov 0   ;;  %v798_v2 = vld [vmem:[#allocation2 + $0x40] sm:$0xff]   ;;  %v800_v4 = vld [vmem:[#allocation2 + $0x48] sm:$0xff]  }
  0x5e   : > { %704 = vmatprep.subr.bf16.mxu1 %v972_v0  ;;  %708 = vmatprep.mubr.msk.bf16.mxu1 %vm973_vm0, %v972_v0  ;;  %v799_v3 = vld [vmem:[#allocation2] sm:$0xff]   ;;  %v801_v5 = vld [vmem:[#allocation2 + $0x8] sm:$0xff]   ;;  %s649_s20 = sshll.u32 %s956_s15, 1  ;;  %v802_v6 = vld [vmem:[#allocation2 + $0x50] sm:$0xff]   ;;  %vm426_vm1 = vcmask 261120   ;;  %s648_s10 = sshll.u32 %s1148_s25, 4 }
  0x5f   : > { %797 = vset.pattern.permute.xlu0 %v974_v1  ;;  %679 = vmatprep.subr.bf16.mxu0 %v798_v2  ;;  %p244_p4 = scmp.lt.s32.totalorder %s649_s20, 3  ;;  %v803_v7 = vld [vmem:[#allocation2 + $0x10] sm:$0xff]   ;;  %v804_v8 = vld [vmem:[#allocation2 + $0x58] sm:$0xff]   ;;  %v806_v10 = vld [vmem:[#allocation2 + $0x60] sm:$0xff]   ;;  %s241_s11 = scalar_lea.vmem [#allocation7], %s648_s10 }
  0x60   : > { %680 = vmatpush3.bf16.msra.mxu0 %v799_v3  ;;  %v805_v9 = vld [vmem:[#allocation2 + $0x18] sm:$0xff]   ;;  %v812_v11 = vld [vmem:[#allocation2 + $0x80] sm:$0xff]   ;;  %v808_v13 = vld [vmem:[#allocation2 + $0x68] sm:$0xff]   ;;  %s529_s27 = sshll.u32 %s241_s11, 4  ;;  %s678_s6 = sshll.u32 %s956_s15, 8  ;;  %s1167_s27 = int_to_ptr.vmem [resolvable:$true] %s529_s27 }
  0x61   : > { %681 = vmatprep.subr.bf16.mxu0 %v800_v4  ;;  %s1251_s20 = smov (!%p244_p4, %s649_s20), 3  ;;  %v807_v12 = vld [vmem:[#allocation2 + $0x20] sm:$0xff]   ;;  %705 = vmatpush3.bf16.msra.mxu1 %v812_v11  ;;  %v809_v14 = vld [vmem:[#allocation2 + $0x28] sm:$0xff]   ;;  %v810_v17 = vld [vmem:[#allocation2 + $0x70] sm:$0xff]   ;;  %s1172_s18 = scalar_lea.hbm %s1224_s3, %s678_s6 }
  0x62   : > { %s650_s22 = sshll.u32 %s1251_s20, 3  ;;  %706 = vmatprep.subr.bf16.mxu1 %v972_v0  ;;  %v817_v15 = vld [vmem:[%s1152_s26 + $0x4] ss:$12 sps:$4 sm:$0xff]   ;;  %v819_v18 = vld [vmem:[%s1152_s26 + $0x8] ss:$12 sps:$4 sm:$0xff]   ;;  %s515_s19 = scalar_lea.sflag [#allocation4], %s1148_s25 }
  0x63   : > { %s247_s8 = scalar_lea.vmem %s1223_s2, %s650_s22  ;;  %v818_v16 = vld [vmem:[#allocation2 + $0x88] sm:$0xff]   ;;  %462 = vmatprep.mubr.bf16.mxu0 %v817_v15  ;;  %v811_v21 = vld [vmem:[#allocation2 + $0x30] sm:$0xff]   ;;  %v813_v22 = vld [vmem:[#allocation2 + $0x78] sm:$0xff]   ;;  %s878_s30 = scalar_lea.vmem %s1167_s27, 256 }
  0x64   : > { %682 = vmatpush3.bf16.msra.mxu0 %v801_v5  ;;  %v291_v19 = vld [vmem:[%s247_s8] sm:$0xff]  ;;  %v292_v20 = vld [vmem:[%s247_s8 + $0x8] sm:$0xff]  ;;  %v814_v23 = vld [vmem:[#allocation2 + $0x38] sm:$0xff]   ;;  %p879_p6 = scmp.ne.s32.totalorder %s1167_s27, %s878_s30  ;;  %s975_s15 = smov [#allocation7]  }
  0x65   : > { %683 = vmatprep.subr.bf16.mxu0 %v802_v6  ;;  %707 = vmatpush3.bf16.msra.mxu1 %v818_v16  ;;  %v815_v24 = vld [vmem:[%s1152_s26] ss:$12 sps:$4 sm:$0xff]   ;;  %s882_s4 = sshll.u32 %s975_s15, 4  ;;  %s883_s4 = int_to_ptr.vmem [resolvable:$false] %s882_s4 }
  0x66   : > { %295 = vperm.xlu0 %797, %v291_v19   ;;  %p880_p8 = pnand %p879_p6, %p1090_p10  ;;  %s884_s26 = scalar_lea.vmem %s883_s4, 512 }
  0x67   : > { %p885_p13 = scmp.lt.s32.totalorder %s1167_s27, %s883_s4  ;;  %p886_p0 = scmp.lt.s32.totalorder %s884_s26, %s878_s30 }
  0x68   : > { %684 = vmatpush3.bf16.msra.mxu0 %v803_v7  ;;  %709 = vmatmul.mubr.msk.bf16.vlgmr.msra.gmra.mrb[0].mxu1 %vm426_vm1, %v819_v18  ;;  %p881_p12 = pneg %p880_p8 }
  0x69   : > { %685 = vmatprep.subr.bf16.mxu0 %v804_v8  ;;  %p887_p5 = por %p886_p0, %p885_p13 }
  0x6a   : > { %300 = vperm.xlu0 %797, %v292_v20  }
  0x6b   : > { %p888_p9 = pnand %p887_p5, %p881_p12 }
  0x6c   : > { %686 = vmatpush3.bf16.msra.mxu0 %v805_v9 }
  0x6d   : > { %687 = vmatprep.subr.bf16.mxu0 %v806_v10 }
  0x70   : > { %688 = vmatpush3.bf16.msra.mxu0 %v807_v12 }
  0x71   : > { %689 = vmatprep.subr.bf16.mxu0 %v808_v13 }
  0x74   : > { %690 = vmatpush3.bf16.msra.mxu0 %v809_v14 }
  0x75   : > { %691 = vmatprep.subr.bf16.mxu0 %v810_v17 }
  0x78   : > { %692 = vmatpush3.bf16.msra.mxu0 %v811_v21 }
  0x79   : > { %693 = vmatprep.subr.bf16.mxu0 %v813_v22 }
  0x7c   : > { %694 = vmatpush3.bf16.msra.mxu0 %v814_v23 }
  0x7f   : > { %463 = vmatmul.mubr.bf16.vlgmr.msra.gmra.mrb[0].mxu0 %v815_v24 }
  0xe5   : > { %v296_v29 = vpop.permute.xlu0 %295 }
  0xe9   : > { %v301_v37 = vpop.permute.xlu0 %300 }
 0x13b   : > { %v505_v25 = vpop.f32.mrb[0].mxu1 }
 0x13c   : > { %v710_v26 = vpop.f32.mrb[1].mxu1 }
 0x13d   : > { %v508_v27 = vpop.f32.mrb[2].mxu1 }
 0x13e   : > { %v711_v28 = vpop.f32.mrb[3].mxu1 }
 0x152   : > { %v695_v30 = vpop.f32.mrb[0].mxu0 }
 0x153   : > { %v696_v31 = vpop.f32.mrb[1].mxu0 }
 0x154   : > { %v697_v32 = vadd.f32 %v696_v31, %v695_v30  ;;  %v698_v33 = vpop.f32.mrb[2].mxu0 }
 0x155   : > { %v699_v34 = vpop.f32.mrb[3].mxu0 }
 0x156   : > { %v465_v35 = vadd.f32 %v697_v32, %v296_v29  ;;  %v700_v36 = vadd.f32 %v699_v34, %v698_v33 }
 0x158   : > { %v506_v38 = vadd.f32 %v505_v25, %v465_v35  ;;  %v468_v39 = vadd.f32 %v700_v36, %v301_v37 }
 0x15a   : > { %512 = vst [vmem:[%s241_s11] sm:$0xff] %v506_v38  ;;  %v509_v40 = vadd.f32 %v508_v27, %v468_v39 }
 0x15c   : > { %513 = vst [vmem:[%s241_s11 + $0x8] sm:$0xff] %v509_v40 }
 0x15d   : > { %891 = shalt.err (!%p888_p9)
}
 0x15e   : > { %s892_s20 = scalar_lea.hbm %s1172_s18, 256  ;;  %s896_s7 = scalar_lea.hbm %s1224_s3, 512 }
 0x15f   : > { %p893_p1 = scmp.ne.s32.totalorder %s1172_s18, %s892_s20  ;;  %p897_p7 = scmp.lt.u32.totalorder %s1172_s18, %s1224_s3 }
 0x160   : > { %p898_p11 = scmp.lt.u32.totalorder %s896_s7, %s892_s20  ;;  %p900_p6 = scmp.lt.u32.totalorder %s892_s20, %s1172_s18 }
 0x161   : > { %p894_p2 = pnand %p893_p1, %p1090_p10 }
 0x162   : > { %p899_p4 = por %p898_p11, %p897_p7 }
 0x163   : > { %p895_p3 = pneg %p894_p2 }
 0x164   : > { %p901_p8 = por %p900_p6, %p899_p4 }
 0x166   : > { %p902_p12 = pnand %p901_p8, %p895_p3 }
 0x168   : > { %905 = shalt.err (!%p902_p12)
}
 0x169   : > { %s976_s11 = smov 128   ;;  %s977_s6 = smov 8  }
 0x16a   : > { %721 = dma.vmem_to_hbm [thread:$0]  (%p1090_p10), %s1167_s27, 256, %s1172_s18, %s515_s19, %s976_s11, %s976_s11, %s977_s6  }
 0x16b PF: > { %s544_s9 = sand.u32 1, %s944_s12   ;;  %p1241_p13 = scmp.ne.s32.totalorder %s1232_s23, 0 }
 0x16c   : > { %p1242_p0 = scmp.ge.s32.totalorder %s964_s17, 2  ;;  %s545_s21 = scalar_lea.sflag [#allocation4], %s544_s9 }
 0x16e   : > { %p732_p5 = pnand %p1242_p0, %p1241_p13 }
 0x170   : > { %939 = dma.done.wait (!%p732_p5), %s545_s21, 256  }
 0x171   : > { %941 = vsyncadd (!%p732_p5), %s545_s21, 4294967040  ;;  %s20_s17 = sadd.s32 1, %s964_s17   ;;  %s1243_s12 = smov %s948_s13 }
 0x172   : > { %p17_p9 = scmp.ge.s32.totalorder %s20_s17, 4   ;;  %s1244_s13 = smov %s952_s14 }
 0x173   : > { %s1245_s14 = smov %s1099_s5  ;;  %s1246_s15 = smov %s960_s16 }
 0x174   : > { %s1247_s16 = smov %s1249_s28  ;;  %19 = sbr.rel (!%p17_p9) target bundleno = 7 (0x7), region = 86 }
 0x17b   :  { %550 = vsyncpa [#allocation3], 1 }
 0x17c   :  { %552 = vsyncpa [#allocation3 + $0x1], 1 }
 0x17d   :  { %553 = vsyncpa [#allocation6], 1 }
 0x17e   :  { %555 = vsyncpa [#allocation6 + $0x1], 1 }
 0x17f   :  { %556 = vsyncpa [#allocation4], 1 }
 0x180   :  { %558 = vsyncpa [#allocation4 + $0x1], 1 }

</bundles_post_ra>
